<compile_context>
chip_gen: v5e
topology: v5e:2x2
jax: 0.10.0
libtpu: 0.0.40
codegen_flags: <defaults>
</compile_context>

<pallas_src>
import functools
import math

import jax
import jax.numpy as jnp
from jax.experimental import pallas as pl
from jax.experimental.pallas import tpu as pltpu

D_MODEL = 64
MAX_LEN = 300
DROPOUT_P = 0.01


def make_pe_table(d_model: int = D_MODEL, max_len: int = MAX_LEN) -> jnp.ndarray:
    """Deterministic positional-encoding buffer, matching the torch __init__.

    Note: the module intentionally uses -log(200.0)/d_model (not the usual
    10000.0); kept as-is to match DT_Former exactly.
    """
    position = jnp.arange(max_len, dtype=jnp.float32)[:, None]            # [L, 1]
    div_term = jnp.exp(
        jnp.arange(0, d_model, 2, dtype=jnp.float32) * (-math.log(200.0) / d_model)
    )                                                                     # [D/2]
    pe = jnp.zeros((max_len, d_model), dtype=jnp.float32)
    pe = pe.at[:, 0::2].set(jnp.sin(position * div_term))
    pe = pe.at[:, 1::2].set(jnp.cos(position * div_term))
    return pe[:, None, :]                                                 # [L, 1, D]


def _lowbias32(x):
    """Stateless uint32 mixing hash (lowbias32). Portable jnp fallback PRNG."""
    x = x ^ (x >> jnp.uint32(16))
    x = x * jnp.uint32(0x7FEB352D)
    x = x ^ (x >> jnp.uint32(15))
    x = x * jnp.uint32(0x846CA68B)
    x = x ^ (x >> jnp.uint32(16))
    return x


def _pe_dropout_kernel(seed_ref, x_ref, pe_ref, o_ref, *,
                       batch, p, training, use_hw_prng):
    # x_ref : [TS, batch*D] lane-dense VMEM tile
    # pe_ref: [TS, D]       VMEM tile, replicated across the batch chunks below
    pe = pe_ref[...]
    if batch > 1:
        pe = jnp.concatenate([pe] * batch, axis=-1)        # [TS, batch*D]
    y = x_ref[...] + pe

    if training and p > 0.0:
        # Inverted dropout, decided entirely in the integer domain:
        # bits uniform over int32, keep iff bits >= threshold, P(drop) = p.
        threshold = jnp.int32(int(round(p * (1 << 32))) - (1 << 31))
        if use_hw_prng:
            # TPU hardware PRNG; distinct stream per seq-tile via (seed, tile).
            pltpu.prng_seed(seed_ref[0], pl.program_id(0))
            raw = pltpu.prng_random_bits(y.shape)
            bits = raw if raw.dtype == jnp.int32 else pltpu.bitcast(raw, jnp.int32)
        else:
            # Portable counter-hash path (interpret / non-TPU backends).
            rows, cols = y.shape
            row_ids = jax.lax.broadcasted_iota(jnp.uint32, (rows, cols), 0)
            col_ids = jax.lax.broadcasted_iota(jnp.uint32, (rows, cols), 1)
            tile = pl.program_id(0).astype(jnp.uint32)
            ctr = (tile * jnp.uint32(rows) + row_ids) * jnp.uint32(cols) + col_ids
            seed_u = seed_ref[0].astype(jnp.uint32) * jnp.uint32(0x9E3779B9)
            bits = jax.lax.bitcast_convert_type(_lowbias32(ctr ^ seed_u), jnp.int32)
        keep = bits >= threshold
        y = y * jnp.where(keep, jnp.float32(1.0 / (1.0 - p)), jnp.float32(0.0))

    o_ref[...] = y


def positional_encoding(x, pe_table, *, dropout_p=DROPOUT_P, training=False, seed=0):
    """x: [seq_len, batch, d_model] float32 -> same shape (pe add + dropout)."""
    S, B, D = x.shape
    BD = B * D
    x2 = x.reshape(S, BD)                  # free contiguous reshape -> lane dense
    pe2 = pe_table[:S, 0, :]               # [S, D]

    # Tile the seq axis so each x / out tile is ~2 MiB: large enough to reach
    # the HBM roofline, small enough to double-buffer comfortably within the
    # scoped-VMEM defaults on v5e / v6e / v7x.  For tiny demo shapes TS == S.
    row_bytes = BD * x2.dtype.itemsize
    rows_budget = max(8, ((2 * 1024 * 1024) // row_bytes) // 8 * 8)
    TS = S if S <= rows_budget else rows_budget
    grid = (pl.cdiv(S, TS),)

    seed_arr = jnp.asarray([seed], dtype=jnp.int32)
    kernel = functools.partial(
        _pe_dropout_kernel,
        batch=B,
        p=float(dropout_p),
        training=bool(training),
        use_hw_prng=(jax.default_backend() == "tpu"),
    )

    out2 = pl.pallas_call(
        kernel,
        out_shape=jax.ShapeDtypeStruct((S, BD), x.dtype),
        grid=grid,
        in_specs=[
            pl.BlockSpec(memory_space=pltpu.SMEM),            # seed scalar
            pl.BlockSpec((TS, BD), lambda i: (i, 0)),         # x tile (lane dense)
            pl.BlockSpec((TS, D), lambda i: (i, 0)),          # pe tile
        ],
        out_specs=pl.BlockSpec((TS, BD), lambda i: (i, 0)),
        compiler_params=pltpu.CompilerParams(
            # Independent output tiles (no reduction axis); lets v7x shard the
            # seq-tile loop across its two TensorCores.
            dimension_semantics=("parallel",),
        ),
    )(seed_arr, x2, pe2)
    return out2.reshape(S, B, D)


if __name__ == "__main__":
    key = jax.random.PRNGKey(0)
    S, B, D = 8, 2, D_MODEL
    x = jax.random.normal(key, (S, B, D), dtype=jnp.float32)

    pe_table = make_pe_table(D, MAX_LEN)

    # Eval-mode (dropout disabled) — deterministic, check against reference.
    y_eval = jax.block_until_ready(positional_encoding(x, pe_table, training=False))
    y_ref = x + pe_table[:S]
    assert jnp.allclose(y_eval, y_ref, atol=1e-6), "eval-mode mismatch"

    # Training-mode (inverted dropout, p=0.01) — exercises the in-kernel RNG path.
    y_train = jax.block_until_ready(
        positional_encoding(x, pe_table, training=True, seed=1234)
    )
    assert y_train.shape == (S, B, D)
    # Every surviving element equals (x+pe)/(1-p); dropped ones are exactly 0.
    scaled_ref = y_ref / (1.0 - DROPOUT_P)
    ok = jnp.isclose(y_train, scaled_ref, atol=1e-5) | (y_train == 0.0)
    assert bool(jnp.all(ok)), "training-mode dropout semantics mismatch"

    print("KERNEL_OK")
</pallas_src>

<mosaic_0001>
module attributes {stable_mosaic.version = 11 : i64} {
  func.func @_pe_dropout_kernel(%arg0: i32, %arg1: memref<1xi32, #tpu.memory_space<smem>>, %arg2: memref<8x128xf32, #tpu.memory_space<vmem>>, %arg3: memref<8x64xf32, #tpu.memory_space<vmem>>, %arg4: memref<8x128xf32, #tpu.memory_space<vmem>>) attributes {dimension_semantics = [#tpu.dimension_semantics<parallel>], iteration_bounds = array<i64: 1>, scalar_prefetch = 0 : i64, scratch_operands = 0 : i64, tpu.core_type = #tpu.core_type<tc>, window_params = [{transform_indices = @transform_0, window_bounds = array<i64: 1>}, {transform_indices = @transform_1, window_bounds = array<i64: 8, 128>}, {transform_indices = @transform_2, window_bounds = array<i64: 8, 64>}, {transform_indices = @transform_3, window_bounds = array<i64: 8, 128>}]} {
    %c0 = arith.constant 0 : index
    %c0_0 = arith.constant 0 : index
    %0 = vector.load %arg3[%c0, %c0_0] : memref<8x64xf32, #tpu.memory_space<vmem>>, vector<8x64xf32>
    %1 = tpu.concatenate %0, %0 in 1 : vector<8x64xf32>, vector<8x64xf32> -> vector<8x128xf32>
    %c0_1 = arith.constant 0 : index
    %c0_2 = arith.constant 0 : index
    %2 = vector.load %arg2[%c0_1, %c0_2] : memref<8x128xf32, #tpu.memory_space<vmem>>, vector<8x128xf32>
    %3 = arith.addf %2, %1 : vector<8x128xf32>
    %c0_3 = arith.constant 0 : index
    %c0_4 = arith.constant 0 : index
    %4 = vector.load %arg4[%c0_3, %c0_4] : memref<8x128xf32, #tpu.memory_space<vmem>>, vector<8x128xf32>
    tpu.vector_store %arg4[%c0_3, %c0_4], %3 {strides = array<i32>} : memref<8x128xf32, #tpu.memory_space<vmem>>, vector<8x128xf32>,
    return
  }
  func.func @transform_0(%arg0: i32) -> i32 {
    %c0_i32 = arith.constant 0 : i32
    %c0_i32_0 = arith.constant 0 : i32
    return %c0_i32 : i32
  }
  func.func @transform_1(%arg0: i32) -> (i32, i32) {
    %c0_i32 = arith.constant 0 : i32
    %c0_i32_0 = arith.constant 0 : i32
    return %arg0, %c0_i32 : i32, i32
  }
  func.func @transform_2(%arg0: i32) -> (i32, i32) {
    %c0_i32 = arith.constant 0 : i32
    %c0_i32_0 = arith.constant 0 : i32
    return %arg0, %c0_i32 : i32, i32
  }
  func.func @transform_3(%arg0: i32) -> (i32, i32) {
    %c0_i32 = arith.constant 0 : i32
    %c0_i32_0 = arith.constant 0 : i32
    return %arg0, %c0_i32 : i32, i32
  }
}

</mosaic_0001>

<bundles_post_ra>
// kernel: tpu_custom_call.1
= control target key start
LH: loop header
LB: loop body
LE: loop exit
PB: predicated region body
PF: predicated region fallthrough
CT: control target
= control target key end

     0   :  { %9 = vsyncpa [#allocation4], 0  ;;  %s187_s0 = inlined_call_operand.<no memory space> [shape: s32[1], index: 0, kind: input, shape index: {}]   ;;  %s188_s1 = inlined_call_operand.hbm [shape: f32[8,128], index: 1, kind: input, shape index: {}]   ;;  %s189_s2 = inlined_call_operand.hbm [shape: f32[8,64], index: 2, kind: input, shape index: {}]   ;;  %s190_s3 = inlined_call_operand.hbm [shape: f32[8,128], index: 3, kind: output, shape index: {}]  }
   0x1   :  { %10 = vsyncpa [#allocation7], 0 }
   0x2   :  { %11 = vsyncpa [#allocation5], 0  ;;  %s19_s14 = sshll.u32 %s188_s1, 4  ;;  %s154_s15 = smov [#allocation3]   ;;  %s20_s14 = int_to_ptr.hbm [resolvable:$true] %s19_s14 }
   0x3   :  { %s21_s16 = sshll.u32 %s154_s15, 4  ;;  %s30_s18 = sshll.u32 %s189_s2, 4  ;;  %s22_s16 = int_to_ptr.vmem [resolvable:$true] %s21_s16  ;;  %s31_s18 = int_to_ptr.hbm [resolvable:$true] %s30_s18 }
   0x4   :  { %24 = dma.hbm_to_vmem [thread:$0]  %s20_s14, 128, %s22_s16, [#allocation4]  }
   0x5   :  { %s155_s19 = smov [#allocation6]  }
   0x6   :  { %s32_s20 = sshll.u32 %s155_s19, 4  ;;  %s33_s20 = int_to_ptr.vmem [resolvable:$true] %s32_s20 }
   0x7   :  { %35 = dma.hbm_to_vmem [thread:$0]  %s31_s18, 128, %s33_s20, [#allocation7]  }
   0x8   :  { %148 = dma.done.wait [#allocation4], 128  }
   0x9   :  { %149 = vsyncadd [#allocation4], 4294967168 }
   0xa   :  { %150 = dma.done.wait [#allocation7], 128  }
   0xb   :  { %151 = vsyncadd [#allocation7], 4294967168  ;;  %v44_v0 = vld [vmem:[#allocation6] sm:$0xff]  ;;  %s156_s1 = smov 64   ;;  %vm49_vm0 = vcmask 523264   ;;  %v51_v1 = vld [vmem:[#allocation3] sm:$0xff] }
   0xc   :  { %46 = vrot.lane.b32.xlu0 %v44_v0, %s156_s1  ;;  %s157_s21 = smov [#allocation8]   ;;  %s61_s2 = sshll.u32 %s190_s3, 4  ;;  %s62_s2 = int_to_ptr.hbm [resolvable:$true] %s61_s2 }
   0xd   :  { %s59_s22 = sshll.u32 %s157_s21, 4  ;;  %s60_s22 = int_to_ptr.vmem [resolvable:$true] %s59_s22 }
  0x7e   :  { %v47_v2 = vpop.permute.xlu0 %46 }
  0x7f   :  { %v50_v3 = vsel %vm49_vm0, %v44_v0, %v47_v2 }
  0x80   :  { %v52_v4 = vadd.f32 %v51_v1, %v50_v3 }
  0x82   :  { %53 = vst [vmem:[#allocation8] sm:$0xff] %v52_v4 }
  0x83   :  { %64 = dma.vmem_to_hbm [thread:$0]  %s60_s22, 128, %s62_s2, [#allocation5]  }
  0x84   :  { %152 = dma.done.wait [#allocation5], 128  }
  0x85   :  { %153 = vsyncadd [#allocation5], 4294967168 }
  0x86   :  { %69 = vsyncpa [#allocation4], 1 }
  0x87   :  { %70 = vsyncpa [#allocation7], 1 }
  0x88   :  { %71 = vsyncpa [#allocation5], 1 }

</bundles_post_ra>
